<compile_context>
chip_gen: v5e
topology: v5e:2x2
jax: 0.10.0
libtpu: 0.0.40
codegen_flags: <defaults>
</compile_context>

<pallas_src>
import functools

import jax
import jax.numpy as jnp
from jax.experimental import pallas as pl
from jax.experimental.pallas import tpu as pltpu


def mlp_kernel(*refs, kinds):
    """refs = (x_ref, w0, b0, w1, b1, ..., w_{d-1}, b_{d-1}, out_ref).

    Layouts (batch on lanes):
      x_ref   : (f_in, tile_n)
      w_l     : (f_out_l, f_in_l)  for "tiny_k" / "mxu" layers (PyTorch layout)
                (f_in_l, 1)        for "tiny_m" layers (pre-transposed outside)
      b_l     : (f_out_l, 1)
      out_ref : (f_out_last, tile_n)
    """
    x_ref = refs[0]
    out_ref = refs[-1]
    param_refs = refs[1:-1]
    depth = len(kinds)

    h = x_ref[...].astype(jnp.float32)                  # (f_in, tile_n)
    for l, kind in enumerate(kinds):
        w = param_refs[2 * l][...]
        b = param_refs[2 * l + 1][...]
        if kind == "tiny_k":
            # f_in <= 4: VPU broadcast FMAs; a K=2 MXU pass would waste >98%
            # of the systolic array on every generation (worst on v5e).
            z = jnp.broadcast_to(b, (w.shape[0], h.shape[1]))
            for k in range(w.shape[1]):
                z = z + w[:, k:k + 1] * h[k:k + 1, :]
            h = z
        elif kind == "tiny_m":
            # f_out == 1: VPU multiply + XLU cross-sublane reduce instead of a
            # 1-row MXU pass serialized at the end of the kernel.  w arrives
            # pre-transposed as (f_in, 1), so no in-kernel transpose needed.
            h = jnp.sum(w * h, axis=0, keepdims=True) + b
        else:
            h = jnp.dot(w, h, preferred_element_type=jnp.float32) + b
        if l < depth - 1:                               # Tanh on all but last layer
            h = jnp.tanh(h)
    out_ref[...] = h.astype(out_ref.dtype)


def _layer_kind(f_out, f_in):
    if f_in <= 4:
        return "tiny_k"
    if f_out == 1:
        return "tiny_m"
    return "mxu"


def net_forward_cols(x_cols, weights, biases, *, tile_n=512):
    """Column-layout forward: x_cols (f_in, N) -> (f_out_last, N).

    Hot-path entry point: no pad/transpose HBM round-trips around the kernel.
    N must be a multiple of tile_n (pad the collocation batch once, outside
    the training loop, if needed); tile_n must be a multiple of 128 so every
    lane axis is unmasked.
    """
    f_in, N = x_cols.shape
    f_out_last = weights[-1].shape[0]
    assert tile_n % 128 == 0, "tile_n must be a multiple of 128 (lane width)"
    assert N % tile_n == 0, "N must be a multiple of tile_n"
    grid_n = N // tile_n
    # v7x: keep grid_n >= 2 (and even) so both TensorCores get work.
    # v5e/v6e: single TC -> fewer/larger tiles amortize the ~0.35 us per-step
    # overhead; tile_n in {512, 1024} keeps the (32, tile_n) f32 activation
    # register-resident.  VMEM is not the binding constraint on any chip.

    kinds = []
    params = []
    in_specs = [pl.BlockSpec((f_in, tile_n), lambda i: (0, i))]
    flops = 0
    transcendentals = 0
    for idx, (w, b) in enumerate(zip(weights, biases)):
        f_out_l, f_in_l = w.shape
        kind = _layer_kind(f_out_l, f_in_l)
        kinds.append(kind)
        # Pre-transpose tiny-M weights once (tiny, constant across training).
        w_pass = w.T if kind == "tiny_m" else w
        b_pass = b.reshape(-1, 1)
        # Full-array blocks with constant index_map: parameters stay
        # VMEM-resident across all grid steps (no per-step re-DMA).
        in_specs.append(pl.BlockSpec(w_pass.shape, lambda i: (0, 0)))
        in_specs.append(pl.BlockSpec(b_pass.shape, lambda i: (0, 0)))
        params.extend([w_pass, b_pass])
        flops += 2 * N * int(w.size)
        if idx < len(weights) - 1:
            transcendentals += N * f_out_l
    out_spec = pl.BlockSpec((f_out_last, tile_n), lambda i: (0, i))

    bytes_accessed = 4 * (int(x_cols.size) + N * f_out_last
                          + sum(int(w.size) + int(b.size)
                                for w, b in zip(weights, biases)))

    kernel = functools.partial(mlp_kernel, kinds=tuple(kinds))
    return pl.pallas_call(
        kernel,
        out_shape=jax.ShapeDtypeStruct((f_out_last, N), x_cols.dtype),
        grid_spec=pltpu.PrefetchScalarGridSpec(
            num_scalar_prefetch=0,
            grid=(grid_n,),
            in_specs=in_specs,
            out_specs=out_spec,
        ),
        compiler_params=pltpu.CompilerParams(
            dimension_semantics=("parallel",)),
        cost_estimate=pl.CostEstimate(
            flops=flops,
            transcendentals=transcendentals,
            bytes_accessed=bytes_accessed),
    )(x_cols, *params)


def net_forward(x, weights, biases, *, tile_n=512):
    """Row-layout convenience wrapper: x (N, f_in) -> (N, f_out_last).

    NOTE: adds a pad + two transposes around the kernel (extra HBM round
    trips); do NOT use in the PINN training hot path -- keep the collocation
    points in column layout and call net_forward_cols directly.
    """
    N, _ = x.shape
    n_pad = -N % tile_n
    x_cols = jnp.pad(x, ((0, n_pad), (0, 0))).T
    out_cols = net_forward_cols(x_cols, weights, biases, tile_n=tile_n)
    return out_cols.T[:N, :]


def init_params(key, layers):
    """PyTorch-default-style init: U(-1/sqrt(fan_in), +1/sqrt(fan_in)).

    Weights in native PyTorch layout (f_out, f_in); biases (f_out,).
    """
    weights, biases = [], []
    for i in range(len(layers) - 1):
        fan_in, fan_out = layers[i], layers[i + 1]
        key, kw, kb = jax.random.split(key, 3)
        bound = 1.0 / jnp.sqrt(jnp.float32(fan_in))
        w = jax.random.uniform(kw, (fan_out, fan_in), jnp.float32, -bound, bound)
        b = jax.random.uniform(kb, (fan_out,), jnp.float32, -bound, bound)
        weights.append(w)
        biases.append(b)
    return weights, biases


def reference_forward(x, weights, biases):
    """Pure-JAX reference in standard (N, f_in) row layout."""
    h = x
    depth = len(weights)
    for l in range(depth):
        h = h @ weights[l].T + biases[l]
        if l < depth - 1:
            h = jnp.tanh(h)
    return h


if __name__ == "__main__":
    # PINN-style MLP: input (x, t) -> hidden 32 x3 -> scalar u.
    layers = [2, 32, 32, 32, 1]
    N = 1024          # collocation points; tile_n=512 -> grid=2 (both v7x TCs busy)
    tile_n = 512

    key = jax.random.PRNGKey(0)
    key, kx = jax.random.split(key)
    # Hot-path layout: collocation points kept in (f_in, N) column layout
    # end-to-end -> no wrapper pad/transpose round-trips around the kernel.
    x_cols = jax.random.uniform(kx, (layers[0], N), jnp.float32, -1.0, 1.0)

    weights, biases = init_params(key, layers)

    out_cols = net_forward_cols(x_cols, weights, biases, tile_n=tile_n)
    out_cols = jax.block_until_ready(out_cols)

    ref = reference_forward(x_cols.T, weights, biases)   # (N, 1)
    assert out_cols.shape == (layers[-1], N)
    assert jnp.allclose(out_cols.T, ref, atol=1e-5, rtol=1e-5)

    # Also exercise the row-layout convenience wrapper once (non-hot-path).
    out_rows = jax.block_until_ready(net_forward(x_cols.T, weights, biases,
                                                 tile_n=tile_n))
    assert jnp.allclose(out_rows, ref, atol=1e-5, rtol=1e-5)

    print("KERNEL_OK")
</pallas_src>

<mosaic_0001>
module attributes {stable_mosaic.version = 11 : i64} {
  func.func @mlp_kernel(%arg0: i32, %arg1: memref<2x512xf32, #tpu.memory_space<vmem>>, %arg2: memref<32x2xf32, #tpu.memory_space<vmem>>, %arg3: memref<32x1xf32, #tpu.memory_space<vmem>>, %arg4: memref<32x32xf32, #tpu.memory_space<vmem>>, %arg5: memref<32x1xf32, #tpu.memory_space<vmem>>, %arg6: memref<32x32xf32, #tpu.memory_space<vmem>>, %arg7: memref<32x1xf32, #tpu.memory_space<vmem>>, %arg8: memref<32x1xf32, #tpu.memory_space<vmem>>, %arg9: memref<1x1xf32, #tpu.memory_space<vmem>>, %arg10: memref<1x512xf32, #tpu.memory_space<vmem>>) attributes {dimension_semantics = [#tpu.dimension_semantics<parallel>], iteration_bounds = array<i64: 2>, scalar_prefetch = 0 : i64, scratch_operands = 0 : i64, tpu.core_type = #tpu.core_type<tc>, window_params = [{transform_indices = @transform_0, window_bounds = array<i64: 2, 512>}, {pipeline_mode = #tpu.pipeline_mode<synchronous>, transform_indices = @transform_1, window_bounds = array<i64: 32, 2>}, {pipeline_mode = #tpu.pipeline_mode<synchronous>, transform_indices = @transform_2, window_bounds = array<i64: 32, 1>}, {pipeline_mode = #tpu.pipeline_mode<synchronous>, transform_indices = @transform_3, window_bounds = array<i64: 32, 32>}, {pipeline_mode = #tpu.pipeline_mode<synchronous>, transform_indices = @transform_4, window_bounds = array<i64: 32, 1>}, {pipeline_mode = #tpu.pipeline_mode<synchronous>, transform_indices = @transform_5, window_bounds = array<i64: 32, 32>}, {pipeline_mode = #tpu.pipeline_mode<synchronous>, transform_indices = @transform_6, window_bounds = array<i64: 32, 1>}, {pipeline_mode = #tpu.pipeline_mode<synchronous>, transform_indices = @transform_7, window_bounds = array<i64: 32, 1>}, {pipeline_mode = #tpu.pipeline_mode<synchronous>, transform_indices = @transform_8, window_bounds = array<i64: 1, 1>}, {transform_indices = @transform_9, window_bounds = array<i64: 1, 512>}]} {
    %c0 = arith.constant 0 : index
    %c0_0 = arith.constant 0 : index
    %0 = vector.load %arg1[%c0, %c0_0] : memref<2x512xf32, #tpu.memory_space<vmem>>, vector<2x512xf32>
    %c0_1 = arith.constant 0 : index
    %c0_2 = arith.constant 0 : index
    %1 = vector.load %arg2[%c0_1, %c0_2] : memref<32x2xf32, #tpu.memory_space<vmem>>, vector<32x2xf32>
    %c0_3 = arith.constant 0 : index
    %c0_4 = arith.constant 0 : index
    %2 = vector.load %arg3[%c0_3, %c0_4] : memref<32x1xf32, #tpu.memory_space<vmem>>, vector<32x1xf32>
    %3 = vector.shape_cast %2 : vector<32x1xf32> to vector<32x1xf32>
    %4 = vector.broadcast %3 : vector<32x1xf32> to vector<32x512xf32>
    %5 = vector.extract_strided_slice %1 {offsets = [0, 0], sizes = [32, 1], strides = [1, 1]} : vector<32x2xf32> to vector<32x1xf32>
    %6 = vector.extract_strided_slice %0 {offsets = [0, 0], sizes = [1, 512], strides = [1, 1]} : vector<2x512xf32> to vector<1x512xf32>
    %7 = vector.broadcast %5 : vector<32x1xf32> to vector<32x512xf32>
    %8 = vector.broadcast %6 : vector<1x512xf32> to vector<32x512xf32>
    %9 = arith.mulf %7, %8 : vector<32x512xf32>
    %10 = arith.addf %4, %9 : vector<32x512xf32>
    %11 = vector.extract_strided_slice %1 {offsets = [0, 1], sizes = [32, 1], strides = [1, 1]} : vector<32x2xf32> to vector<32x1xf32>
    %12 = vector.extract_strided_slice %0 {offsets = [1, 0], sizes = [1, 512], strides = [1, 1]} : vector<2x512xf32> to vector<1x512xf32>
    %13 = vector.broadcast %11 : vector<32x1xf32> to vector<32x512xf32>
    %14 = vector.broadcast %12 : vector<1x512xf32> to vector<32x512xf32>
    %15 = arith.mulf %13, %14 : vector<32x512xf32>
    %16 = arith.addf %10, %15 : vector<32x512xf32>
    %17 = math.tanh %16 : vector<32x512xf32>
    %c0_5 = arith.constant 0 : index
    %c0_6 = arith.constant 0 : index
    %18 = vector.load %arg4[%c0_5, %c0_6] : memref<32x32xf32, #tpu.memory_space<vmem>>, vector<32x32xf32>
    %c0_7 = arith.constant 0 : index
    %c0_8 = arith.constant 0 : index
    %19 = vector.load %arg5[%c0_7, %c0_8] : memref<32x1xf32, #tpu.memory_space<vmem>>, vector<32x1xf32>
    %cst = arith.constant dense<0.000000e+00> : vector<32x512xf32>
    %20 = tpu.matmul %18, %17, %cst {dimension_numbers = #tpu.dot_dimension_numbers<[1], [0], [0], [1], [0, 0, 1, 1], [], []>} : vector<32x32xf32>, vector<32x512xf32>, vector<32x512xf32> -> vector<32x512xf32>
    %21 = vector.broadcast %19 : vector<32x1xf32> to vector<32x512xf32>
    %22 = arith.addf %20, %21 : vector<32x512xf32>
    %23 = math.tanh %22 : vector<32x512xf32>
    %c0_9 = arith.constant 0 : index
    %c0_10 = arith.constant 0 : index
    %24 = vector.load %arg6[%c0_9, %c0_10] : memref<32x32xf32, #tpu.memory_space<vmem>>, vector<32x32xf32>
    %c0_11 = arith.constant 0 : index
    %c0_12 = arith.constant 0 : index
    %25 = vector.load %arg7[%c0_11, %c0_12] : memref<32x1xf32, #tpu.memory_space<vmem>>, vector<32x1xf32>
    %cst_13 = arith.constant dense<0.000000e+00> : vector<32x512xf32>
    %26 = tpu.matmul %24, %23, %cst_13 {dimension_numbers = #tpu.dot_dimension_numbers<[1], [0], [0], [1], [0, 0, 1, 1], [], []>} : vector<32x32xf32>, vector<32x512xf32>, vector<32x512xf32> -> vector<32x512xf32>
    %27 = vector.broadcast %25 : vector<32x1xf32> to vector<32x512xf32>
    %28 = arith.addf %26, %27 : vector<32x512xf32>
    %29 = math.tanh %28 : vector<32x512xf32>
    %c0_14 = arith.constant 0 : index
    %c0_15 = arith.constant 0 : index
    %30 = vector.load %arg8[%c0_14, %c0_15] : memref<32x1xf32, #tpu.memory_space<vmem>>, vector<32x1xf32>
    %c0_16 = arith.constant 0 : index
    %c0_17 = arith.constant 0 : index
    %31 = vector.load %arg9[%c0_16, %c0_17] : memref<1x1xf32, #tpu.memory_space<vmem>>, vector<1x1xf32>
    %32 = vector.broadcast %30 : vector<32x1xf32> to vector<32x512xf32>
    %33 = arith.mulf %32, %29 : vector<32x512xf32>
    %cst_18 = arith.constant dense<0.000000e+00> : vector<512xf32>
    %34 = vector.multi_reduction <add>, %33, %cst_18 [0] : vector<32x512xf32> to vector<512xf32>
    %35 = vector.shape_cast %34 : vector<512xf32> to vector<1x512xf32>
    %36 = vector.broadcast %31 : vector<1x1xf32> to vector<1x512xf32>
    %37 = arith.addf %35, %36 : vector<1x512xf32>
    %c0_19 = arith.constant 0 : index
    %c0_20 = arith.constant 0 : index
    %38 = vector.load %arg10[%c0_19, %c0_20] : memref<1x512xf32, #tpu.memory_space<vmem>>, vector<1x512xf32>
    tpu.vector_store %arg10[%c0_19, %c0_20], %37 {strides = array<i32>} : memref<1x512xf32, #tpu.memory_space<vmem>>, vector<1x512xf32>,
    return
  }
  func.func @transform_0(%arg0: i32) -> (i32, i32) {
    %c0_i32 = arith.constant 0 : i32
    %c0_i32_0 = arith.constant 0 : i32
    return %c0_i32, %arg0 : i32, i32
  }
  func.func @transform_1(%arg0: i32) -> (i32, i32) {
    %c0_i32 = arith.constant 0 : i32
    %c0_i32_0 = arith.constant 0 : i32
    %c0_i32_1 = arith.constant 0 : i32
    return %c0_i32, %c0_i32_0 : i32, i32
  }
  func.func @transform_2(%arg0: i32) -> (i32, i32) {
    %c0_i32 = arith.constant 0 : i32
    %c0_i32_0 = arith.constant 0 : i32
    %c0_i32_1 = arith.constant 0 : i32
    return %c0_i32, %c0_i32_0 : i32, i32
  }
  func.func @transform_3(%arg0: i32) -> (i32, i32) {
    %c0_i32 = arith.constant 0 : i32
    %c0_i32_0 = arith.constant 0 : i32
    %c0_i32_1 = arith.constant 0 : i32
    return %c0_i32, %c0_i32_0 : i32, i32
  }
  func.func @transform_4(%arg0: i32) -> (i32, i32) {
    %c0_i32 = arith.constant 0 : i32
    %c0_i32_0 = arith.constant 0 : i32
    %c0_i32_1 = arith.constant 0 : i32
    return %c0_i32, %c0_i32_0 : i32, i32
  }
  func.func @transform_5(%arg0: i32) -> (i32, i32) {
    %c0_i32 = arith.constant 0 : i32
    %c0_i32_0 = arith.constant 0 : i32
    %c0_i32_1 = arith.constant 0 : i32
    return %c0_i32, %c0_i32_0 : i32, i32
  }
  func.func @transform_6(%arg0: i32) -> (i32, i32) {
    %c0_i32 = arith.constant 0 : i32
    %c0_i32_0 = arith.constant 0 : i32
    %c0_i32_1 = arith.constant 0 : i32
    return %c0_i32, %c0_i32_0 : i32, i32
  }
  func.func @transform_7(%arg0: i32) -> (i32, i32) {
    %c0_i32 = arith.constant 0 : i32
    %c0_i32_0 = arith.constant 0 : i32
    %c0_i32_1 = arith.constant 0 : i32
    return %c0_i32, %c0_i32_0 : i32, i32
  }
  func.func @transform_8(%arg0: i32) -> (i32, i32) {
    %c0_i32 = arith.constant 0 : i32
    %c0_i32_0 = arith.constant 0 : i32
    %c0_i32_1 = arith.constant 0 : i32
    return %c0_i32, %c0_i32_0 : i32, i32
  }
  func.func @transform_9(%arg0: i32) -> (i32, i32) {
    %c0_i32 = arith.constant 0 : i32
    %c0_i32_0 = arith.constant 0 : i32
    return %c0_i32, %arg0 : i32, i32
  }
}

</mosaic_0001>

<bundles_post_ra>
// kernel: tpu_custom_call.1
= control target key start
LH: loop header
LB: loop body
LE: loop exit
PB: predicated region body
PF: predicated region fallthrough
CT: control target
= control target key end

     0   :  { %s1602_s0 = inlined_call_operand.vmem [shape: f32[2,1024], index: 0, kind: input, shape index: {}]   ;;  %s1603_s1 = inlined_call_operand.vmem [shape: f32[32,2], index: 1, kind: input, shape index: {}]   ;;  %s1604_s2 = inlined_call_operand.vmem [shape: f32[32,1], index: 2, kind: input, shape index: {}]   ;;  %s1605_s3 = inlined_call_operand.vmem [shape: f32[32,32], index: 3, kind: input, shape index: {}]   ;;  %s1606_s4 = inlined_call_operand.vmem [shape: f32[32,1], index: 4, kind: input, shape index: {}]   ;;  %s1607_s5 = inlined_call_operand.vmem [shape: f32[32,32], index: 5, kind: input, shape index: {}]   ;;  %s1608_s6 = inlined_call_operand.vmem [shape: f32[32,1], index: 6, kind: input, shape index: {}]   ;;  %s1609_s7 = inlined_call_operand.vmem [shape: f32[32,1], index: 7, kind: input, shape index: {}]   ;;  %s1610_s8 = inlined_call_operand.<no memory space> [shape: f32[1,1], index: 8, kind: input, shape index: {}]   ;;  %s1611_s9 = inlined_call_operand.hbm [shape: f32[1,1024], index: 9, kind: output, shape index: {}]  }
   0x1   :  { %v14_v0 = vstv %s1610_s8 }
   0x2   :  { %15 = vst [vmem:[#allocation2] sm:$0x1] %v14_v0 }
   0x3   :  { %16 = vsyncpa [#allocation4], 0 }
   0x4   :  { %18 = vsyncpa [#allocation4 + $0x1], 0  ;;  %s1340_s11 = smov 0   ;;  %s1342_s12 = smov 0  }
   0x5   :  { %s1344_s13 = smov 0   ;;  %s1346_s14 = smov 0  }
   0x6 LB: > { %s1031_s8 = sadd.s32 4294967295, %s1283_s14   ;;  %s1032_s15 = sadd.s32 4294967294, %s1283_s14   ;;  %s1283_s14 = sphi %s1346_s14, %s1617_s14   ;;  %s1279_s13 = sphi %s1344_s13, %s1616_s13   ;;  %s1275_s12 = sphi %s1342_s12, %s1615_s12   ;;  %s1271_s11 = sphi %s1340_s11, %s1614_s11  }
   0x7   : > { %s1363_s16 = sadd.s32 1, %s1283_s14   ;;  %s225_s17 = sadd.s32 1, %s1279_s13 }
   0x8   : > { %s222_s18 = ssub.s32 %s1283_s14, %s1363_s16  ;;  %p235_p0 = scmp.ne.s32.totalorder %s1279_s13, %s1275_s12 }
   0x9   : > { %p223_p1 = scmp.eq.s32.totalorder %s222_s18, 0  ;;  %p236_p2 = scmp.eq.s32.totalorder %s1031_s8, 1 }
   0xa   : > { %p241_p3 = scmp.ne.s32.totalorder %s1275_s12, %s1271_s11  ;;  %p242_p4 = scmp.eq.s32.totalorder %s1032_s15, 1 }
   0xb   : > { %s1375_s19 = scalar_select %p223_p1, %s1279_s13, %s225_s17  }
   0xc   : > { %p1377_p5 = por %p236_p2, %p235_p0  ;;  %p1381_p6 = por %p242_p4, %p241_p3 }
   0xd   : > { %p1035_p7 = scmp.ge.s32.totalorder %s1283_s14, 1  ;;  %p293_p8 = scmp.lt.s32.totalorder %s1283_s14, 3 }
   0xf   : > { %p294_p9 = pnand %p1035_p7, %p293_p8 }
  0x10   : > { %s1425_s17 = sshll.u32 (!%p294_p9), %s1031_s8, 2  ;;  %s326_s10 = sand.u32 (!%p294_p9), 1, %s1275_s12  }
  0x11   : > { %297 = sbr.rel (%p294_p9) target bundleno = 547 (0x223), region = 56  ;;  %p330_p10 = scmp.lt.s32.totalorder (!%p294_p9), %s1425_s17, 7 }
  0x12   : > { %s1036_s15 = sshll.u32 (!%p294_p9), %s326_s10, 2  ;;  %s968_s23 = scalar_lea.hbm (!%p294_p9), %s1611_s9, %s1425_s17 }
  0x13   : > { %s328_s24 = scalar_lea.vmem (!%p294_p9), [#allocation3], %s1036_s15  ;;  %s972_s8 = sshll.u32 (!%p294_p9), %s968_s23, 4  ;;  %s973_s8 = int_to_ptr.hbm [resolvable:$true] %s972_s8 }
  0x14   : > { %s1235_s26 = sshra.s32 (!%p294_p9), %s973_s8, 4  ;;  %s1241_s30 = scalar_lea.hbm (!%p294_p9), %s1611_s9, 8  ;;  %s1236_s26 = int_to_ptr.hbm [resolvable:$true] %s1235_s26 }
  0x15   : > { %s1237_s27 = scalar_lea.hbm (!%p294_p9), %s1236_s26, 4  ;;  %p1242_p0 = scmp.lt.s32.totalorder (!%p294_p9), %s1236_s26, %s1611_s9 }
  0x16   : > { %v343_v1 = vld [vmem:[%s1604_s2 + $0x10] sm:$0xff]  ;;  %v340_v2 = vld [vmem:[%s1603_s1 + $0x18] sm:$0xff]  ;;  %v1285_v4 = vmov 0   ;;  %v338_v5 = vld [vmem:[%s1603_s1 + $0x8] sm:$0xff]  ;;  %v1286_v7 = vmov 1   ;;  %s331_s18 = scalar_select %p330_p10, %s1425_s17, 7 }
  0x17   : > { %v339_v3 = vld [vmem:[%s1603_s1 + $0x10] sm:$0xff]  ;;  %1119 = vset.pattern.permute.xlu2 %v1285_v4  ;;  %1117 = vset.pattern.permute.xlu1 %v1285_v4  ;;  %v344_v6 = vld [vmem:[%s1604_s2 + $0x18] sm:$0xff]  ;;  %v337_v8 = vld [vmem:[%s1603_s1] sm:$0xff]  ;;  %vm534_vm0 = vcmask 261120   ;;  %vm945_vm1 = vcmask 1040384   ;;  %vm947_vm2 = vcmask 1042434   ;;  %p1238_p11 = scmp.ne.s32.totalorder %s1236_s26, %s1237_s27  ;;  %p1243_p1 = scmp.lt.s32.totalorder %s1241_s30, %s1237_s27 }
  0x18   : > { %1116 = vset.pattern.permute.xlu0 %v1285_v4  ;;  %357 = vperm.xlu2 %1119, %v343_v1   ;;  %v342_v9 = vld [vmem:[%s1604_s2 + $0x8] sm:$0xff]  ;;  %v341_v10 = vld [vmem:[%s1604_s2] sm:$0xff]  ;;  %v512_v11 = vld [vmem:[%s1606_s4 + $0x10] sm:$0xff]  ;;  %s1038_s22 = sshll.u32 %s331_s18, 1  ;;  %vm949_vm3 = vcmask 1041408   ;;  %s958_s17 = scalar_lea.sflag [#allocation4], %s326_s10 }
  0x19   : > { %382 = vperm.xlu0 %1116, %v340_v2   ;;  %377 = vperm.xlu1 %1117, %v339_v3   ;;  %v683_v12 = vld [vmem:[%s1608_s6] sm:$0xff]  ;;  %v685_v13 = vld [vmem:[%s1608_s6 + $0x10] sm:$0xff]  ;;  %v852_v14 = vld [vmem:[%s1609_s7 + $0x8] sm:$0xff]  ;;  %s333_s25 = scalar_lea.vmem %s1602_s0, %s1038_s22  ;;  %p1239_p12 = pnand %p1238_p11, %p1377_p5 }
  0x1a   : > { %v855_v15 = vld [vmem:[#allocation2] sm:$0x1]  ;;  %p1244_p2 = por %p1243_p1, %p1242_p0 }
  0x1b   : > { %v336_v17 = vld [vmem:[%s333_s25] sm:$0xff]  ;;  %s970_s25 = sshll.u32 %s328_s24, 4  ;;  %p1240_p13 = pneg %p1239_p12  ;;  %s971_s25 = int_to_ptr.vmem [resolvable:$true] %s970_s25 }
  0x1c   : > { %v386_v20 = vperm.slane %v336_v17, 0  ;;  %v387_v21 = vperm.slane %v336_v17, 2  ;;  %v388_v22 = vperm.slane %v336_v17, 4  ;;  %v389_v23 = vperm.slane %v336_v17, 6 }
  0x1d   : > { %v446_v24 = vperm.slane %v336_v17, 1  ;;  %v447_v25 = vperm.slane %v336_v17, 3  ;;  %v448_v26 = vperm.slane %v336_v17, 5  ;;  %v449_v27 = vperm.slane %v336_v17, 7  ;;  %p1245_p3 = pnand %p1244_p2, %p1240_p13 }
  0x1e   : > { %v394_v29 = vperm.slane %v386_v20, 0  ;;  %v1434_v30 = vperm.slane %v387_v21, 0  ;;  %v1436_v31 = vperm.slane %v388_v22, 0  ;;  %v1438_v32 = vperm.slane %v389_v23, 0 }
  0x1f   : > { %v1440_v33 = vperm.slane %v446_v24, 1  ;;  %v1442_v34 = vperm.slane %v447_v25, 1  ;;  %v1444_v35 = vperm.slane %v448_v26, 1  ;;  %v1446_v36 = vperm.slane %v449_v27, 1 }
  0x20   : > { %372 = vperm.xlu2 %1119, %v338_v5  }
  0x21   : > { %362 = vperm.xlu0 %1116, %v344_v6   ;;  %1118 = vset.pattern.permute.xlu1 %v1286_v7 }
  0x22   : > { %443 = vperm.xlu1 %1118, %v340_v2  }
  0x28   : > { %367 = vperm.xlu2 %1119, %v337_v8  }
  0x29   : > { %1120 = vset.pattern.permute.xlu0 %v1286_v7 }
  0x2a   : > { %439 = vperm.xlu0 %1120, %v339_v3   ;;  %1121 = vset.pattern.permute.xlu1 %v1285_v4 }
  0x2b   : > { %352 = vperm.xlu1 %1121, %v342_v9  }
  0x30   : > { %347 = vperm.xlu2 %1119, %v341_v10  }
  0x32   : > { %431 = vperm.xlu0 %1120, %v337_v8  }
  0x33   : > { %1122 = vset.pattern.permute.xlu1 %v1286_v7 }
  0x34   : > { %435 = vperm.xlu1 %1122, %v338_v5  }
  0x38   : > { %526 = vperm.xlu2 %1119, %v512_v11  }
  0x3a   : > { %1124 = vset.pattern.permute.xlu0 %v1285_v4 }
  0x3c   : > { %1123 = vset.pattern.permute.xlu1 %v1285_v4 }
  0x40   : > { %689 = vperm.xlu2 %1119, %v683_v12  }
  0x48   : > { %699 = vperm.xlu2 %1119, %v685_v13  }
  0x50   : > { %863 = vperm.xlu2 %1119, %v852_v14   ;;  %v513_v14 = vld [vmem:[%s1606_s4 + $0x18] sm:$0xff] }
  0x51   : > { %531 = vperm.xlu1 %1123, %v513_v14  }
  0x58   : > { %930 = vperm.xlu2 %1119, %v855_v15  }
  0x72   : > { %v358_v16 = vpop.permute.xlu2 %357 }
  0x7a   : > { %v1432_v28 = vpop.permute.xlu2 %372 }
  0x7b   : > { %v403_v17 = vmul.f32 %v1434_v30, %v1432_v28 }
  0x82   : > { %v368_v58 = vpop.permute.xlu2 %367 }
  0x83   : > { %v398_v13 = vmul.f32 %v394_v29, %v368_v58  ;;  %v399_v20 = vmul.f32 %v1434_v30, %v368_v58  ;;  %v400_v23 = vmul.f32 %v1436_v31, %v368_v58  ;;  %v401_v24 = vmul.f32 %v1438_v32, %v368_v58  ;;  %v511_v58 = vld [vmem:[%s1606_s4 + $0x8] sm:$0xff] }
  0x84   : > { %521 = vperm.xlu0 %1124, %v511_v58  }
  0x8a   : > { %v348_v21 = vpop.permute.xlu2 %347 }
  0x8b   : > { %v383_v18 = vpop.permute.xlu0 %382  ;;  %v378_v19 = vpop.permute.xlu1 %377  ;;  %v414_v25 = vadd.f32 %v398_v13, %v348_v21 }
  0x8c   : > { %v410_v37 = vmul.f32 %v394_v29, %v383_v18  ;;  %v411_v38 = vmul.f32 %v1434_v30, %v383_v18  ;;  %v412_v39 = vmul.f32 %v1436_v31, %v383_v18  ;;  %v413_v40 = vmul.f32 %v1438_v32, %v383_v18 }
  0x8d   : > { %v406_v54 = vmul.f32 %v394_v29, %v378_v19  ;;  %v407_v55 = vmul.f32 %v1434_v30, %v378_v19  ;;  %v408_v56 = vmul.f32 %v1436_v31, %v378_v19  ;;  %v409_v59 = vmul.f32 %v1438_v32, %v378_v19 }
  0x8e   : > { %v404_v18 = vmul.f32 %v1436_v31, %v1432_v28  ;;  %v405_v19 = vmul.f32 %v1438_v32, %v1432_v28  ;;  %v415_v32 = vadd.f32 %v399_v20, %v348_v21 }
  0x8f   : > { %v422_v60 = vadd.f32 %v406_v54, %v358_v16  ;;  %v423_v61 = vadd.f32 %v407_v55, %v358_v16  ;;  %v424_v62 = vadd.f32 %v408_v56, %v358_v16  ;;  %v425_v5 = vadd.f32 %v409_v59, %v358_v16 }
  0x90   : > { %v402_v16 = vmul.f32 %v394_v29, %v1432_v28 }
  0x92   : > { %v527_v20 = vpop.permute.xlu2 %526 }
  0x93   : > { %v363_v41 = vpop.permute.xlu0 %362 }
  0x94   : > { %v444_v42 = vpop.permute.xlu1 %443  ;;  %v426_v43 = vadd.f32 %v410_v37, %v363_v41  ;;  %v427_v44 = vadd.f32 %v411_v38, %v363_v41  ;;  %v428_v45 = vadd.f32 %v412_v39, %v363_v41  ;;  %v429_v46 = vadd.f32 %v413_v40, %v363_v41 }
  0x95   : > { %v470_v47 = vmul.f32 %v1440_v33, %v444_v42  ;;  %v471_v48 = vmul.f32 %v1442_v34, %v444_v42  ;;  %v472_v49 = vmul.f32 %v1444_v35, %v444_v42  ;;  %v473_v50 = vmul.f32 %v1446_v36, %v444_v42 }
  0x97   : > { %v486_v51 = vadd.f32 %v470_v47, %v426_v43  ;;  %v487_v52 = vadd.f32 %v471_v48, %v427_v44  ;;  %v488_v53 = vadd.f32 %v472_v49, %v428_v45  ;;  %v489_v57 = vadd.f32 %v473_v50, %v429_v46 }
  0x99   : > { %1125 = vtanh.f32 %v486_v51  ;;  %v416_v51 = vadd.f32 %v400_v23, %v348_v21 }
  0x9a   : > { %1127 = vtanh.f32 %v487_v52 }
  0x9b   : > { %1129 = vtanh.f32 %v488_v53 }
  0x9c   : > { %v440_v63 = vpop.permute.xlu0 %439  ;;  %1131 = vtanh.f32 %v489_v57  ;;  %v684_v57 = vld [vmem:[%s1608_s6 + $0x8] sm:$0xff] }
  0x9d   : > { %v466_v0 = vmul.f32 %v1440_v33, %v440_v63  ;;  %v467_v1 = vmul.f32 %v1442_v34, %v440_v63  ;;  %v468_v2 = vmul.f32 %v1444_v35, %v440_v63  ;;  %v469_v3 = vmul.f32 %v1446_v36, %v440_v63  ;;  %v353_v4 = vpop.permute.xlu1 %352 }
  0x9e   : > { %v418_v27 = vadd.f32 %v402_v16, %v353_v4  ;;  %v419_v29 = vadd.f32 %v403_v17, %v353_v4  ;;  %v420_v37 = vadd.f32 %v404_v18, %v353_v4  ;;  %v421_v43 = vadd.f32 %v405_v19, %v353_v4  ;;  %v507_v4 = vld [vmem:[%s1605_s3 + $0x8] sm:$0xff] }
  0x9f   : > { %v1126_v6 = vpop.eup %1125  ;;  %v482_v7 = vadd.f32 %v466_v0, %v422_v60  ;;  %v483_v8 = vadd.f32 %v467_v1, %v423_v61  ;;  %v484_v9 = vadd.f32 %v468_v2, %v424_v62  ;;  %v485_v11 = vadd.f32 %v469_v3, %v425_v5  ;;  %v506_v60 = vld [vmem:[%s1605_s3] sm:$0xff]  ;;  %v686_v3 = vld [vmem:[%s1608_s6 + $0x18] sm:$0xff] }
  0xa0   : > { %v1128_v10 = vpop.eup %1127  ;;  %559 = vmatpush.msra.mxu0 %v1126_v6  ;;  %v851_v2 = vld [vmem:[%s1609_s7] sm:$0xff]  ;;  %704 = vperm.xlu0 %1124, %v686_v3   ;;  %v854_v5 = vld [vmem:[%s1609_s7 + $0x18] sm:$0xff]  ;;  %v853_v6 = vld [vmem:[%s1609_s7 + $0x10] sm:$0xff] }
  0xa1   : > { %v1130_v12 = vpop.eup %1129  ;;  %588 = vmatpush.msra.mxu1 %v1128_v10  ;;  %1133 = vtanh.f32 %v482_v7  ;;  %v508_v7 = vld [vmem:[%s1605_s3 + $0x10] sm:$0xff] }
  0xa2   : > { %v1132_v15 = vpop.eup %1131  ;;  %617 = vmatpush.msra.mxu2 %v1130_v12  ;;  %1135 = vtanh.f32 %v483_v8  ;;  %v509_v8 = vld [vmem:[%s1605_s3 + $0x18] sm:$0xff] }
  0xa3   : > { %646 = vmatpush.msra.mxu3 %v1132_v15  ;;  %1137 = vtanh.f32 %v484_v9 }
  0xa4   : > { %v432_v22 = vpop.permute.xlu0 %431  ;;  %1139 = vtanh.f32 %v485_v11 }
  0xa5   : > { %v458_v26 = vmul.f32 %v1440_v33, %v432_v22  ;;  %v459_v38 = vmul.f32 %v1442_v34, %v432_v22  ;;  %v460_v44 = vmul.f32 %v1444_v35, %v432_v22  ;;  %v461_v47 = vmul.f32 %v1446_v36, %v432_v22 }
  0xa6   : > { %v436_v39 = vpop.permute.xlu1 %435 }
  0xa7   : > { %v1134_v40 = vpop.eup %1133  ;;  %v462_v28 = vmul.f32 %v1440_v33, %v436_v39  ;;  %v463_v30 = vmul.f32 %v1442_v34, %v436_v39  ;;  %v464_v41 = vmul.f32 %v1444_v35, %v436_v39  ;;  %v465_v31 = vmul.f32 %v1446_v36, %v436_v39  ;;  %v510_v34 = vld [vmem:[%s1606_s4] sm:$0xff] }
  0xa8   : > { %v1136_v42 = vpop.eup %1135  ;;  %560 = vmatpush.msra.mxu0 %v1134_v40  ;;  %v474_v45 = vadd.f32 %v458_v26, %v414_v25  ;;  %516 = vperm.xlu1 %1123, %v510_v34   ;;  %v417_v35 = vadd.f32 %v401_v24, %v348_v21  ;;  %v475_v53 = vadd.f32 %v459_v38, %v415_v32 }
  0xa9   : > { %v1138_v46 = vpop.eup %1137  ;;  %589 = vmatpush.msra.mxu1 %v1136_v42  ;;  %v478_v48 = vadd.f32 %v462_v28, %v418_v27  ;;  %v479_v49 = vadd.f32 %v463_v30, %v419_v29  ;;  %v480_v33 = vadd.f32 %v464_v41, %v420_v37  ;;  %v481_v52 = vadd.f32 %v465_v31, %v421_v43 }
  0xaa   : > { %v1140_v50 = vpop.eup %1139  ;;  %618 = vmatpush.msra.mxu2 %v1138_v46  ;;  %1141 = vtanh.f32 %v474_v45  ;;  %v476_v36 = vadd.f32 %v460_v44, %v416_v51  ;;  %v477_v54 = vadd.f32 %v461_v47, %v417_v35  ;;  %868 = vperm.xlu0 %1124, %v853_v6   ;;  %v679_v51 = vld [vmem:[%s1607_s5] sm:$0xff] }
  0xab   : > { %647 = vmatpush.msra.mxu3 %v1140_v50  ;;  %1143 = vtanh.f32 %v478_v48 }
  0xac   : > { %1145 = vtanh.f32 %v479_v49 }
  0xad   : > { %1147 = vtanh.f32 %v480_v33 }
  0xae   : > { %1149 = vtanh.f32 %v481_v52 }
  0xaf   : > { %1151 = vtanh.f32 %v475_v53 }
  0xb0   : > { %v1142_v55 = vpop.eup %1141  ;;  %1153 = vtanh.f32 %v476_v36  ;;  %694 = vperm.xlu1 %1123, %v684_v57  }
  0xb1   : > { %v1144_v56 = vpop.eup %1143  ;;  %1155 = vtanh.f32 %v477_v54 }
  0xb2   : > { %v1146_v59 = vpop.eup %1145  ;;  %561 = vmatpush.msra.mxu0 %v1144_v56 }
  0xb3   : > { %v1148_v61 = vpop.eup %1147  ;;  %590 = vmatpush.msra.mxu1 %v1146_v59  ;;  %v680_v59 = vld [vmem:[%s1607_s5 + $0x8] sm:$0xff] }
  0xb4   : > { %v1150_v62 = vpop.eup %1149  ;;  %619 = vmatpush.msra.mxu2 %v1148_v61  ;;  %562 = vmatpush.msra.mxu0 %v1142_v55 }
  0xb5   : > { %v1152_v63 = vpop.eup %1151  ;;  %648 = vmatpush.msra.mxu3 %v1150_v62  ;;  %1039 = vmatmul.msk.f32.vlgmr.msra.gmra.mxu0 %vm534_vm0, %v506_v60 }
  0xb6   : > { %v1154_v0 = vpop.eup %1153  ;;  %591 = vmatpush.msra.mxu1 %v1152_v63  ;;  %v681_v63 = vld [vmem:[%s1607_s5 + $0x10] sm:$0xff] }
  0xb7   : > { %v1156_v1 = vpop.eup %1155  ;;  %620 = vmatpush.msra.mxu2 %v1154_v0  ;;  %1043 = vmatmul.msk.f32.vlgmr.msra.gmra.mxu1 %vm534_vm0, %v506_v60  ;;  %v682_v0 = vld [vmem:[%s1607_s5 + $0x18] sm:$0xff] }
  0xb8   : > { %649 = vmatpush.msra.mxu3 %v1156_v1  ;;  %1047 = vmatmul.msk.f32.vlgmr.msra.gmra.mxu2 %vm534_vm0, %v506_v60 }
  0xb9   : > { %1051 = vmatmul.msk.f32.vlgmr.msra.gmra.mxu3 %vm534_vm0, %v506_v60  ;;  %858 = vperm.xlu1 %1123, %v851_v2  }
  0xbd   : > { %1040 = vmatmul.msk.f32.gmra.mxu0 %vm534_vm0, %v507_v4 }
  0xbf   : > { %1044 = vmatmul.msk.f32.gmra.mxu1 %vm534_vm0, %v507_v4 }
  0xc0   : > { %1048 = vmatmul.msk.f32.gmra.mxu2 %vm534_vm0, %v507_v4 }
  0xc1   : > { %1052 = vmatmul.msk.f32.gmra.mxu3 %vm534_vm0, %v507_v4  ;;  %873 = vperm.xlu1 %1123, %v854_v5   ;;  %v690_v4 = vpop.permute.xlu2 %689 }
  0xc3   : > { %v532_v16 = vpop.permute.xlu1 %531 }
  0xc5   : > { %1041 = vmatmul.msk.f32.gmra.mxu0 %vm534_vm0, %v508_v7 }
  0xc7   : > { %1045 = vmatmul.msk.f32.gmra.mxu1 %vm534_vm0, %v508_v7 }
  0xc8   : > { %1049 = vmatmul.msk.f32.gmra.mxu2 %vm534_vm0, %v508_v7 }
  0xc9   : > { %1053 = vmatmul.msk.f32.gmra.mxu3 %vm534_vm0, %v508_v7 }
  0xcd   : > { %1042 = vmatmul.msk.f32.gmra.mxu0 %vm534_vm0, %v509_v8 }
  0xcf   : > { %1046 = vmatmul.msk.f32.gmra.mxu1 %vm534_vm0, %v509_v8 }
  0xd0   : > { %1050 = vmatmul.msk.f32.gmra.mxu2 %vm534_vm0, %v509_v8 }
  0xd1   : > { %1054 = vmatmul.msk.f32.gmra.mxu3 %vm534_vm0, %v509_v8 }
  0xf6   : > { %v522_v22 = vpop.permute.xlu0 %521 }
 0x11a   : > { %v517_v38 = vpop.permute.xlu1 %516 }
 0x122   : > { %v695_v6 = vpop.permute.xlu1 %694 }
 0x132   : > { %v564_v9 = vpop.f32.mrf.mxu0 }
 0x133   : > { %v565_v40 = vadd.f32 %v564_v9, %v517_v38 }
 0x134   : > { %v593_v10 = vpop.f32.mrf.mxu1 }
 0x135   : > { %v594_v30 = vadd.f32 %v593_v10, %v517_v38 }
 0x13a   : > { %v567_v11 = vpop.f32.mrf.mxu0 }
 0x13b   : > { %v622_v12 = vpop.f32.mrf.mxu2  ;;  %v568_v29 = vadd.f32 %v567_v11, %v522_v22 }
 0x13c   : > { %v651_v13 = vpop.f32.mrf.mxu3  ;;  %v596_v14 = vpop.f32.mrf.mxu1  ;;  %v623_v50 = vadd.f32 %v622_v12, %v517_v38 }
 0x13d   : > { %v597_v28 = vadd.f32 %v596_v14, %v522_v22  ;;  %v652_v35 = vadd.f32 %v651_v13, %v517_v38  ;;  %v700_v13 = vpop.permute.xlu2 %699 }
 0x142   : > { %v570_v15 = vpop.f32.mrf.mxu0 }
 0x143   : > { %v625_v17 = vpop.f32.mrf.mxu2  ;;  %v571_v23 = vadd.f32 %v570_v15, %v527_v20 }
 0x144   : > { %v654_v18 = vpop.f32.mrf.mxu3  ;;  %v599_v19 = vpop.f32.mrf.mxu1  ;;  %v626_v48 = vadd.f32 %v625_v17, %v522_v22 }
 0x145   : > { %v600_v39 = vadd.f32 %v599_v19, %v527_v20  ;;  %v655_v33 = vadd.f32 %v654_v18, %v522_v22  ;;  %v705_v18 = vpop.permute.xlu0 %704  ;;  %v1560_v22 = vpop.permute.xlu1 %858 }
 0x14a   : > { %v573_v21 = vpop.f32.mrf.mxu0 }
 0x14b   : > { %v628_v24 = vpop.f32.mrf.mxu2  ;;  %v574_v25 = vadd.f32 %v573_v21, %v532_v16 }
 0x14c   : > { %v657_v26 = vpop.f32.mrf.mxu3  ;;  %v602_v27 = vpop.f32.mrf.mxu1  ;;  %v629_v42 = vadd.f32 %v628_v24, %v527_v20 }
 0x14d   : > { %1157 = vtanh.f32 %v574_v25  ;;  %v603_v37 = vadd.f32 %v602_v27, %v532_v16  ;;  %v658_v45 = vadd.f32 %v657_v26, %v527_v20 }
 0x14e   : > { %1159 = vtanh.f32 %v571_v23 }
 0x14f   : > { %1161 = vtanh.f32 %v603_v37 }
 0x150   : > { %1163 = vtanh.f32 %v568_v29 }
 0x151   : > { %1165 = vtanh.f32 %v600_v39 }
 0x152   : > { %1167 = vtanh.f32 %v565_v40 }
 0x153   : > { %v1158_v41 = vpop.eup %1157  ;;  %v631_v31 = vpop.f32.mrf.mxu2  ;;  %1169 = vtanh.f32 %v597_v28 }
 0x154   : > { %v632_v32 = vadd.f32 %v631_v31, %v532_v16  ;;  %v660_v43 = vpop.f32.mrf.mxu3  ;;  %731 = vmatpush.msrb.mxu0 %v1158_v41  ;;  %v1160_v44 = vpop.eup %1159  ;;  %1171 = vtanh.f32 %v594_v30 }
 0x155   : > { %v661_v46 = vadd.f32 %v660_v43, %v532_v16  ;;  %v1162_v47 = vpop.eup %1161  ;;  %v864_v28 = vpop.permute.xlu2 %863 }
 0x156   : > { %1173 = vtanh.f32 %v632_v32  ;;  %732 = vmatpush.msrb.mxu0 %v1160_v44  ;;  %v1164_v49 = vpop.eup %1163  ;;  %760 = vmatpush.msrb.mxu1 %v1162_v47  ;;  %v869_v43 = vpop.permute.xlu0 %868 }
 0x157   : > { %1175 = vtanh.f32 %v661_v46  ;;  %v1166_v34 = vpop.eup %1165 }
 0x158   : > { %1177 = vtanh.f32 %v629_v42  ;;  %733 = vmatpush.msrb.mxu0 %v1164_v49  ;;  %v1168_v52 = vpop.eup %1167  ;;  %761 = vmatpush.msrb.mxu1 %v1166_v34 }
 0x159   : > { %1179 = vtanh.f32 %v658_v45  ;;  %v1170_v53 = vpop.eup %1169 }
 0x15a   : > { %1181 = vtanh.f32 %v626_v48  ;;  %734 = vmatpush.msrb.mxu0 %v1168_v52  ;;  %v1172_v36 = vpop.eup %1171  ;;  %762 = vmatpush.msrb.mxu1 %v1170_v53 }
 0x15b   : > { %1183 = vtanh.f32 %v655_v33  ;;  %1055 = vmatmul.msk.f32.vlgmr.msrb.gmra.mxu0 %vm534_vm0, %v679_v51 }
 0x15c   : > { %v1174_v54 = vpop.eup %1173  ;;  %1185 = vtanh.f32 %v623_v50  ;;  %763 = vmatpush.msrb.mxu1 %v1172_v36 }
 0x15d   : > { %v1176_v55 = vpop.eup %1175  ;;  %1187 = vtanh.f32 %v652_v35  ;;  %789 = vmatpush.msrb.mxu2 %v1174_v54  ;;  %1059 = vmatmul.msk.f32.vlgmr.msrb.gmra.mxu1 %vm534_vm0, %v679_v51 }
 0x15e   : > { %v1178_v56 = vpop.eup %1177  ;;  %818 = vmatpush.msrb.mxu3 %v1176_v55 }
 0x15f   : > { %v1180_v57 = vpop.eup %1179  ;;  %790 = vmatpush.msrb.mxu2 %v1178_v56 }
 0x160   : > { %v1182_v58 = vpop.eup %1181  ;;  %819 = vmatpush.msrb.mxu3 %v1180_v57 }
 0x161   : > { %v1184_v60 = vpop.eup %1183  ;;  %791 = vmatpush.msrb.mxu2 %v1182_v58 }
 0x162   : > { %v1186_v61 = vpop.eup %1185  ;;  %820 = vmatpush.msrb.mxu3 %v1184_v60 }
 0x163   : > { %v1188_v62 = vpop.eup %1187  ;;  %792 = vmatpush.msrb.mxu2 %v1186_v61  ;;  %1056 = vmatmul.msk.f32.gmra.mxu0 %vm534_vm0, %v680_v59 }
 0x164   : > { %821 = vmatpush.msrb.mxu3 %v1188_v62  ;;  %1063 = vmatmul.msk.f32.vlgmr.msrb.gmra.mxu2 %vm534_vm0, %v679_v51 }
 0x165   : > { %1067 = vmatmul.msk.f32.vlgmr.msrb.gmra.mxu3 %vm534_vm0, %v679_v51  ;;  %1060 = vmatmul.msk.f32.gmra.mxu1 %vm534_vm0, %v680_v59  ;;  %v874_v51 = vpop.permute.xlu1 %873 }
 0x16b   : > { %1057 = vmatmul.msk.f32.gmra.mxu0 %vm534_vm0, %v681_v63 }
 0x16c   : > { %1064 = vmatmul.msk.f32.gmra.mxu2 %vm534_vm0, %v680_v59 }
 0x16d   : > { %1068 = vmatmul.msk.f32.gmra.mxu3 %vm534_vm0, %v680_v59  ;;  %1061 = vmatmul.msk.f32.gmra.mxu1 %vm534_vm0, %v681_v63 }
 0x173   : > { %1058 = vmatmul.msk.f32.gmra.mxu0 %vm534_vm0, %v682_v0 }
 0x174   : > { %1065 = vmatmul.msk.f32.gmra.mxu2 %vm534_vm0, %v681_v63 }
 0x175   : > { %1069 = vmatmul.msk.f32.gmra.mxu3 %vm534_vm0, %v681_v63  ;;  %1062 = vmatmul.msk.f32.gmra.mxu1 %vm534_vm0, %v682_v0 }
 0x17c   : > { %1066 = vmatmul.msk.f32.gmra.mxu2 %vm534_vm0, %v682_v0 }
 0x17d   : > { %1070 = vmatmul.msk.f32.gmra.mxu3 %vm534_vm0, %v682_v0 }
 0x1d8   : > { %v736_v1 = vpop.f32.mrf.mxu0 }
 0x1d9   : > { %v737_v8 = vadd.f32 %v736_v1, %v690_v4 }
 0x1da   : > { %v765_v2 = vpop.f32.mrf.mxu1 }
 0x1db   : > { %v766_v11 = vadd.f32 %v765_v2, %v690_v4  ;;  %1189 = vtanh.f32 %v737_v8 }
 0x1dd   : > { %1191 = vtanh.f32 %v766_v11 }
 0x1e0   : > { %v739_v3 = vpop.f32.mrf.mxu0 }
 0x1e1   : > { %v740_v14 = vadd.f32 %v739_v3, %v695_v6  ;;  %v1190_v24 = vpop.eup %1189 }
 0x1e2   : > { %v768_v5 = vpop.f32.mrf.mxu1  ;;  %v876_v34 = vmul.f32 %v1190_v24, %v1560_v22 }
 0x1e3   : > { %v769_v12 = vadd.f32 %v768_v5, %v695_v6  ;;  %v1192_v25 = vpop.eup %1191 }
 0x1e4   : > { %v877_v47 = vmul.f32 %v1192_v25, %v1560_v22 }
 0x1e5   : > { %1193 = vtanh.f32 %v769_v12 }
 0x1e6   : > { %1195 = vtanh.f32 %v740_v14 }
 0x1e7   : > { %v794_v7 = vpop.f32.mrf.mxu2 }
 0x1e8   : > { %v823_v9 = vpop.f32.mrf.mxu3  ;;  %v742_v10 = vpop.f32.mrf.mxu0  ;;  %v795_v29 = vadd.f32 %v794_v7, %v690_v4 }
 0x1e9   : > { %v743_v17 = vadd.f32 %v742_v10, %v700_v13  ;;  %v824_v39 = vadd.f32 %v823_v9, %v690_v4 }
 0x1ea   : > { %v771_v15 = vpop.f32.mrf.mxu1 }
 0x1eb   : > { %v772_v16 = vadd.f32 %v771_v15, %v700_v13  ;;  %v1194_v27 = vpop.eup %1193 }
 0x1ec   : > { %v1196_v38 = vpop.eup %1195  ;;  %v881_v31 = vmul.f32 %v1194_v27, %v864_v28 }
 0x1ed   : > { %1197 = vtanh.f32 %v772_v16  ;;  %v880_v44 = vmul.f32 %v1196_v38, %v864_v28 }
 0x1ee   : > { %1199 = vtanh.f32 %v743_v17  ;;  %v901_v52 = vadd.f32 %v881_v31, %v877_v47 }
 0x1ef   : > { %v797_v19 = vpop.f32.mrf.mxu2  ;;  %v892_v53 = vadd.f32 %v880_v44, %v876_v34 }
 0x1f0   : > { %v826_v20 = vpop.f32.mrf.mxu3  ;;  %v745_v21 = vpop.f32.mrf.mxu0  ;;  %v798_v30 = vadd.f32 %v797_v19, %v695_v6 }
 0x1f1   : > { %v746_v23 = vadd.f32 %v745_v21, %v705_v18  ;;  %v827_v42 = vadd.f32 %v826_v20, %v695_v6 }
 0x1f2   : > { %v774_v26 = vpop.f32.mrf.mxu1 }
 0x1f3   : > { %1201 = vtanh.f32 %v746_v23  ;;  %v775_v37 = vadd.f32 %v774_v26, %v705_v18  ;;  %v1198_v40 = vpop.eup %1197 }
 0x1f4   : > { %v1200_v41 = vpop.eup %1199  ;;  %v885_v48 = vmul.f32 %v1198_v40, %v869_v43 }
 0x1f5   : > { %1203 = vtanh.f32 %v775_v37  ;;  %v884_v50 = vmul.f32 %v1200_v41, %v869_v43 }
 0x1f6   : > { %1205 = vtanh.f32 %v795_v29  ;;  %v902_v54 = vadd.f32 %v901_v52, %v885_v48 }
 0x1f7   : > { %v800_v32 = vpop.f32.mrf.mxu2  ;;  %1207 = vtanh.f32 %v824_v39  ;;  %v893_v57 = vadd.f32 %v892_v53, %v884_v50 }
 0x1f8   : > { %v801_v45 = vadd.f32 %v800_v32, %v700_v13  ;;  %v829_v46 = vpop.f32.mrf.mxu3  ;;  %1209 = vtanh.f32 %v798_v30  ;;  %v931_v30 = vpop.permute.xlu2 %930 }
 0x1f9   : > { %v830_v49 = vadd.f32 %v829_v46, %v700_v13  ;;  %v1202_v33 = vpop.eup %1201  ;;  %1211 = vtanh.f32 %v827_v42 }
 0x1fa   : > { %v888_v36 = vmul.f32 %v1202_v33, %v874_v51  ;;  %1213 = vtanh.f32 %v801_v45 }
 0x1fb   : > { %v1204_v35 = vpop.eup %1203  ;;  %1215 = vtanh.f32 %v830_v49 }
 0x1fc   : > { %v889_v55 = vmul.f32 %v1204_v35, %v874_v51  ;;  %v1206_v56 = vpop.eup %1205  ;;  %v894_v62 = vadd.f32 %v893_v57, %v888_v36 }
 0x1fd   : > { %v1208_v58 = vpop.eup %1207  ;;  %v878_v10 = vmul.f32 %v1206_v56, %v1560_v22 }
 0x1fe   : > { %v903_v59 = vadd.f32 %v902_v54, %v889_v55  ;;  %v1210_v61 = vpop.eup %1209  ;;  %v895_v9 = vrot.slane %v894_v62, 4  ;;  %v879_v12 = vmul.f32 %v1208_v58, %v1560_v22 }
 0x1ff   : > { %v803_v60 = vpop.f32.mrf.mxu2  ;;  %v1212_v1 = vpop.eup %1211  ;;  %v882_v6 = vmul.f32 %v1210_v61, %v864_v28 }
 0x200   : > { %v804_v63 = vadd.f32 %v803_v60, %v705_v18  ;;  %v832_v0 = vpop.f32.mrf.mxu3  ;;  %v904_v2 = vrot.slane %v903_v59, 4  ;;  %v1214_v4 = vpop.eup %1213  ;;  %v883_v8 = vmul.f32 %v1212_v1, %v864_v28  ;;  %v896_v19 = vadd.f32 %v895_v9, %v894_v62 }
 0x201   : > { %v833_v3 = vadd.f32 %v832_v0, %v705_v18  ;;  %v1216_v5 = vpop.eup %1215  ;;  %v886_v11 = vmul.f32 %v1214_v4, %v869_v43  ;;  %v910_v15 = vadd.f32 %v882_v6, %v878_v10 }
 0x202   : > { %1217 = vtanh.f32 %v804_v63  ;;  %v905_v7 = vadd.f32 %v904_v2, %v903_v59  ;;  %v887_v14 = vmul.f32 %v1216_v5, %v869_v43  ;;  %v919_v17 = vadd.f32 %v883_v8, %v879_v12 }
 0x203   : > { %1219 = vtanh.f32 %v833_v3  ;;  %v911_v20 = vadd.f32 %v910_v15, %v886_v11  ;;  %v897_v27 = vrot.slane %v896_v19, 2  ;;  %v933_v43 = vperm.slane %v931_v30, 0 }
 0x204   : > { %v906_v13 = vrot.slane %v905_v7, 2  ;;  %v920_v24 = vadd.f32 %v919_v17, %v887_v14 }
 0x205   : > { %v898_v40 = vadd.f32 %v897_v27, %v896_v19 }
 0x206   : > { %v907_v23 = vadd.f32 %v906_v13, %v905_v7 }
 0x207   : > { %v899_v44 = vrot.slane %v898_v40, 1 }
 0x208   : > { %v1218_v16 = vpop.eup %1217  ;;  %v908_v38 = vrot.slane %v907_v23, 1 }
 0x209   : > { %v1220_v18 = vpop.eup %1219  ;;  %v890_v21 = vmul.f32 %v1218_v16, %v874_v51  ;;  %v900_v33 = vadd.f32 %v899_v44, %v898_v40 }
 0x20a   : > { %v891_v25 = vmul.f32 %v1220_v18, %v874_v51  ;;  %v909_v42 = vadd.f32 %v908_v38, %v907_v23  ;;  %v952_v51 = vlaneseq }
 0x20b   : > { %v912_v26 = vadd.f32 %v911_v20, %v890_v21  ;;  %v934_v36 = vadd.f32 %v933_v43, %v900_v33 }
 0x20c   : > { %v921_v29 = vadd.f32 %v920_v24, %v891_v25  ;;  %v935_v48 = vadd.f32 %v933_v43, %v909_v42  ;;  %vm954_vm4 = vcmp.lt.s32.totalorder %v952_v51, 512 }
 0x20d   : > { %v913_v37 = vrot.slane %v912_v26, 4 }
 0x20e   : > { %v922_v22 = vrot.slane %v921_v29, 4  ;;  %v942_v35 = vrot.slane %v935_v48, 7 }
 0x20f   : > { %v914_v39 = vadd.f32 %v913_v37, %v912_v26 }
 0x210   : > { %v923_v28 = vadd.f32 %v922_v22, %v921_v29  ;;  %v946_v55 = vsel %vm945_vm1, %v934_v36, %v942_v35 }
 0x211   : > { %v915_v41 = vrot.slane %v914_v39, 2 }
 0x212   : > { %v924_v31 = vrot.slane %v923_v28, 2 }
 0x213   : > { %v916_v32 = vadd.f32 %v915_v41, %v914_v39 }
 0x214   : > { %v925_v45 = vadd.f32 %v924_v31, %v923_v28 }
 0x215   : > { %v917_v46 = vrot.slane %v916_v32, 1 }
 0x216   : > { %v926_v47 = vrot.slane %v925_v45, 1 }
 0x217   : > { %v918_v49 = vadd.f32 %v917_v46, %v916_v32 }
 0x218   : > { %v927_v34 = vadd.f32 %v926_v47, %v925_v45 }
 0x219   : > { %v936_v50 = vadd.f32 %v933_v43, %v918_v49 }
 0x21a   : > { %v937_v52 = vadd.f32 %v933_v43, %v927_v34 }
 0x21b   : > { %v943_v53 = vrot.slane %v936_v50, 6 }
 0x21c   : > { %v944_v54 = vrot.slane %v937_v52, 5 }
 0x21e   : > { %v948_v56 = vsel %vm947_vm2, %v943_v53, %v944_v54 }
 0x21f   : > { %v950_v57 = vsel %vm949_vm3, %v946_v55, %v948_v56 }
 0x220   : > { %956 = vst.msk [vmem:[%s328_s24] sm:$0xf] %vm954_vm4, %v950_v57 }
 0x221   : > { %1248 = shalt.err (!%p1245_p3)
}
 0x222   : > { %1075 = dma.vmem_to_hbm [thread:$0]  (%p1377_p5), %s971_s25, 64, %s973_s8, %s958_s17  }
 0x223 PF: > { %p1081_p4 = scmp.ge.s32.totalorder %s1283_s14, 2  ;;  %s984_s10 = sand.u32 1, %s1271_s11  }
 0x224   : > { %s985_s22 = scalar_lea.sflag [#allocation4], %s984_s10 }
 0x225   : > { %p1078_p7 = pnand %p1081_p4, %p1381_p6 }
 0x227   : > { %p1079_p8 = pneg %p1078_p7 }
 0x229   : > { %1266 = dma.done.wait (%p1079_p8), %s985_s22, 64  }
 0x22a   : > { %1268 = vsyncadd (%p1079_p8), %s985_s22, 4294967232  ;;  %p21_p9 = scmp.ge.s32.totalorder %s1363_s16, 4   ;;  %s1614_s11 = smov %s1275_s12 }
 0x22b   : > { %s1615_s12 = smov %s1279_s13  ;;  %s1616_s13 = smov %s1375_s19 }
 0x22c   : > { %s1617_s14 = smov %s1363_s16  ;;  %23 = sbr.rel (!%p21_p9) target bundleno = 6 (0x6), region = 91 }
 0x231   :  { %991 = vsyncpa [#allocation4], 1 }
 0x232   :  { %993 = vsyncpa [#allocation4 + $0x1], 1 }

</bundles_post_ra>
